<compile_context>
chip_gen: v7x
topology: tpu7x:2x2x1
jax: 0.10.0
libtpu: 0.0.40
codegen_flags: <defaults>
</compile_context>

<pallas_src>
import functools

import jax
import jax.numpy as jnp
from jax.experimental import pallas as pl
from jax.experimental.pallas import tpu as pltpu


# ---------------------------------------------------------------------------
# Pallas kernel: fused (patch-linear∘fc1 -> relu -> fc2), patches taken
# directly from the natural channel-last layout (no patch matrix in HBM).
# ---------------------------------------------------------------------------
def _patchwise_mlp_kernel(x_ref, w12_ref, b12_ref, w3_ref, b3_ref, o_ref, *,
                          n_kh, n_wp, kwq, d_out):
    # x_ref  : (R, kH, Wp*kW*Q)   R row-bands, each holding Wp patches
    # w12_ref: (kH*kW*Q, H1)      conv∘fc1 composed weight, rows in (kh,kw,q) order
    # b12_ref: (1, H1)            composed bias
    # w3_ref : (H1, Dout)         fc2 weight (transposed)
    # b3_ref : (1, Dout)
    # o_ref  : (R, Wp*Dout)
    b12 = b12_ref[...]
    w3 = w3_ref[...]
    b3 = b3_ref[...]

    # Accumulate each patch's hidden activation over the kH row-chunks.
    acc = [None] * n_wp
    for kh in range(n_kh):
        x_kh = x_ref[:, kh, :]                               # (R, Wp*kW*Q)
        w_kh = w12_ref[kh * kwq:(kh + 1) * kwq, :]           # (kW*Q, H1)
        for wp in range(n_wp):
            part = jnp.dot(x_kh[:, wp * kwq:(wp + 1) * kwq], w_kh,
                           preferred_element_type=jnp.float32)
            acc[wp] = part if acc[wp] is None else acc[wp] + part

    # ReLU + fc2, written per-patch-column into the lane-sliced output block.
    for wp in range(n_wp):
        h = jnp.maximum(acc[wp] + b12, 0.0)
        y = jnp.dot(h, w3, preferred_element_type=jnp.float32) + b3
        o_ref[:, wp * d_out:(wp + 1) * d_out] = y.astype(o_ref.dtype)


def _round_up(v, m):
    return -(-v // m) * m


def _choose_band_tile(n_bands, padded_bytes_per_band, target_bytes=2 << 20):
    """Bands (of Wp patches each) per grid step.

    Big tiles amortize the ~0.35us per-grid-step overhead; the count is kept a
    multiple of 8 (output block sublane alignment) unless a single full-array
    block is used; when everything fits in one tile we still split it in two so
    v7x's two TensorCores both get work (no effect on v5e/v6e)."""
    if n_bands <= 8:
        return n_bands
    r = int(min(n_bands, max(8, target_bytes // max(padded_bytes_per_band, 1))))
    if r < n_bands:
        return max(8, (r // 8) * 8)
    half = _round_up((n_bands + 1) // 2, 8)
    return half if half < n_bands else n_bands


# ---------------------------------------------------------------------------
# Module wrapper
# ---------------------------------------------------------------------------
def patchwise_mlp_forward(x, params, K=(4, 4), S=(4, 4)):
    """x: (B, T, H, W, Q) float32 -> (B, T, H', W', output_dim) float32."""
    assert tuple(K) == tuple(S), "kernel must equal stride for patch-wise conv"
    kH, kW = K
    B, T, H, W, Q = x.shape
    assert H % kH == 0 and W % kW == 0
    Hp, Wp = H // kH, W // kW
    kwq = kW * Q
    n_bands = B * T * Hp

    (w_conv, b_conv, w_fc1, b_fc1, w_fc2, b_fc2) = params
    h0 = w_conv.shape[0]
    h1 = w_fc1.shape[0]
    d_out = w_fc2.shape[0]

    # --- one-time (tiny) weight prep ----------------------------------------
    # conv weight (Cout, Cin, kH, kW) -> rows ordered (kh, kw, q) to match the
    # natural channel-last patch layout, then composed with fc1 (no
    # nonlinearity between conv and fc1).
    w1_nat = jnp.transpose(w_conv, (2, 3, 1, 0)).reshape(kH * kW * Q, h0)
    w12 = jnp.dot(w1_nat, w_fc1.T)                        # (kH*kW*Q, H1)
    b12 = (jnp.dot(b_conv, w_fc1.T) + b_fc1).reshape(1, h1)
    w3 = w_fc2.T                                          # (H1, Dout)
    b3 = b_fc2.reshape(1, d_out)

    # --- zero-copy view of x: (B*T*Hp, kH, Wp*kW*Q) -------------------------
    x_view = x.reshape(n_bands, kH, Wp * kwq)

    itemsize = jnp.dtype(x.dtype).itemsize
    padded_band = _round_up(kH, 8) * _round_up(Wp * kwq, 128) * itemsize
    r = _choose_band_tile(n_bands, padded_band)
    grid = (pl.cdiv(n_bands, r),)

    kernel = functools.partial(_patchwise_mlp_kernel, n_kh=kH, n_wp=Wp,
                               kwq=kwq, d_out=d_out)

    out = pl.pallas_call(
        kernel,
        out_shape=jax.ShapeDtypeStruct((n_bands, Wp * d_out), jnp.float32),
        grid_spec=pltpu.PrefetchScalarGridSpec(
            num_scalar_prefetch=0,
            grid=grid,
            in_specs=[
                pl.BlockSpec((r, kH, Wp * kwq), lambda i: (i, 0, 0)),  # x slab
                pl.BlockSpec((kH * kwq, h1), lambda i: (0, 0)),        # w12
                pl.BlockSpec((1, h1), lambda i: (0, 0)),               # b12
                pl.BlockSpec((h1, d_out), lambda i: (0, 0)),           # fc2 W
                pl.BlockSpec((1, d_out), lambda i: (0, 0)),            # fc2 b
            ],
            out_specs=pl.BlockSpec((r, Wp * d_out), lambda i: (i, 0)),
        ),
        compiler_params=pltpu.CompilerParams(
            dimension_semantics=("parallel",)),
    )(x_view, w12, b12, w3, b3)

    # Pure view back to (B, T, H', W', C).
    return out.reshape(B, T, Hp, Wp, d_out)


def init_params(key, input_dim, output_dim, hidden_dims=(32, 32), K=(4, 4)):
    """Deterministic, PyTorch-shaped parameter init (uniform, Kaiming-ish scale)."""
    kH, kW = K
    h0, h1 = hidden_dims
    keys = jax.random.split(key, 6)

    def u(k, shape, fan_in):
        bound = 1.0 / jnp.sqrt(jnp.float32(fan_in))
        return jax.random.uniform(k, shape, jnp.float32, -bound, bound)

    fan_conv = input_dim * kH * kW
    w_conv = u(keys[0], (h0, input_dim, kH, kW), fan_conv)   # (Cout, Cin, kH, kW)
    b_conv = u(keys[1], (h0,), fan_conv)
    w_fc1 = u(keys[2], (h1, h0), h0)                         # (out, in)
    b_fc1 = u(keys[3], (h1,), h0)
    w_fc2 = u(keys[4], (output_dim, h1), h1)
    b_fc2 = u(keys[5], (output_dim,), h1)
    return (w_conv, b_conv, w_fc1, b_fc1, w_fc2, b_fc2)


def _reference_forward(x, params, K=(4, 4)):
    """Pure-JAX reference mirroring the PyTorch module (unfused), for checking."""
    kH, kW = K
    B, T, H, W, Q = x.shape
    Hp, Wp = H // kH, W // kW
    (w_conv, b_conv, w_fc1, b_fc1, w_fc2, b_fc2) = params
    xp = jnp.transpose(x, (0, 1, 4, 2, 3)).reshape(B, T, Q, Hp, kH, Wp, kW)
    xp = jnp.transpose(xp, (0, 1, 3, 5, 2, 4, 6)).reshape(B * T * Hp * Wp, -1)
    h = xp @ w_conv.reshape(w_conv.shape[0], -1).T + b_conv
    h = h @ w_fc1.T + b_fc1
    h = jnp.maximum(h, 0.0)
    h = h @ w_fc2.T + b_fc2
    return h.reshape(B, T, Hp, Wp, -1)


if __name__ == "__main__":
    # Small shapes consistent with the module's forward: x is (B, T, H, W, Q).
    B, T, H, W, Q = 2, 3, 16, 16, 4
    output_dim = 8
    hidden_dims = (32, 32)
    K = S = (4, 4)

    key = jax.random.PRNGKey(0)
    kx, kp = jax.random.split(key)
    x = jax.random.normal(kx, (B, T, H, W, Q), dtype=jnp.float32)
    params = init_params(kp, Q, output_dim, hidden_dims, K)

    fwd = jax.jit(functools.partial(patchwise_mlp_forward, K=K, S=S))
    out = fwd(x, params)
    jax.block_until_ready(out)

    ref = _reference_forward(x, params, K)
    assert out.shape == (B, T, H // 4, W // 4, output_dim), out.shape
    assert jnp.allclose(out, ref, atol=1e-4, rtol=1e-4), "mismatch vs reference"

    print("KERNEL_OK")
</pallas_src>

<mosaic_0001>
module attributes {stable_mosaic.version = 11 : i64} {
  func.func @_patchwise_mlp_kernel(%arg0: i32, %arg1: memref<16x4x64xf32, #tpu.memory_space<vmem>>, %arg2: memref<64x32xf32, #tpu.memory_space<vmem>>, %arg3: memref<1x32xf32, #tpu.memory_space<vmem>>, %arg4: memref<32x8xf32, #tpu.memory_space<vmem>>, %arg5: memref<1x8xf32, #tpu.memory_space<vmem>>, %arg6: memref<16x32xf32, #tpu.memory_space<vmem>>) attributes {dimension_semantics = [#tpu.dimension_semantics<parallel>], iteration_bounds = array<i64: 2>, scalar_prefetch = 0 : i64, scratch_operands = 0 : i64, tpu.core_type = #tpu.core_type<tc>, window_params = [{transform_indices = @transform_0, window_bounds = array<i64: 16, 4, 64>}, {pipeline_mode = #tpu.pipeline_mode<synchronous>, transform_indices = @transform_1, window_bounds = array<i64: 64, 32>}, {pipeline_mode = #tpu.pipeline_mode<synchronous>, transform_indices = @transform_2, window_bounds = array<i64: 1, 32>}, {pipeline_mode = #tpu.pipeline_mode<synchronous>, transform_indices = @transform_3, window_bounds = array<i64: 32, 8>}, {pipeline_mode = #tpu.pipeline_mode<synchronous>, transform_indices = @transform_4, window_bounds = array<i64: 1, 8>}, {transform_indices = @transform_5, window_bounds = array<i64: 16, 32>}]} {
    %c0 = arith.constant 0 : index
    %c0_0 = arith.constant 0 : index
    %0 = vector.load %arg3[%c0, %c0_0] : memref<1x32xf32, #tpu.memory_space<vmem>>, vector<1x32xf32>
    %c0_1 = arith.constant 0 : index
    %c0_2 = arith.constant 0 : index
    %1 = vector.load %arg4[%c0_1, %c0_2] : memref<32x8xf32, #tpu.memory_space<vmem>>, vector<32x8xf32>
    %c0_3 = arith.constant 0 : index
    %c0_4 = arith.constant 0 : index
    %2 = vector.load %arg5[%c0_3, %c0_4] : memref<1x8xf32, #tpu.memory_space<vmem>>, vector<1x8xf32>
    %c0_5 = arith.constant 0 : index
    %c0_6 = arith.constant 0 : index
    %c0_7 = arith.constant 0 : index
    %3 = vector.load %arg1[%c0_5, %c0_6, %c0_7] : memref<16x4x64xf32, #tpu.memory_space<vmem>>, vector<16x1x64xf32>
    %4 = vector.shape_cast %3 : vector<16x1x64xf32> to vector<16x64xf32>
    %c0_8 = arith.constant 0 : index
    %c0_9 = arith.constant 0 : index
    %5 = vector.load %arg2[%c0_8, %c0_9] : memref<64x32xf32, #tpu.memory_space<vmem>>, vector<16x32xf32>
    %6 = vector.extract_strided_slice %4 {offsets = [0, 0], sizes = [16, 16], strides = [1, 1]} : vector<16x64xf32> to vector<16x16xf32>
    %cst = arith.constant dense<0.000000e+00> : vector<16x32xf32>
    %7 = tpu.matmul %6, %5, %cst {dimension_numbers = #tpu.dot_dimension_numbers<[1], [0], [0], [1], [0, 0, 1, 1], [], []>} : vector<16x16xf32>, vector<16x32xf32>, vector<16x32xf32> -> vector<16x32xf32>
    %8 = vector.extract_strided_slice %4 {offsets = [0, 16], sizes = [16, 16], strides = [1, 1]} : vector<16x64xf32> to vector<16x16xf32>
    %cst_10 = arith.constant dense<0.000000e+00> : vector<16x32xf32>
    %9 = tpu.matmul %8, %5, %cst_10 {dimension_numbers = #tpu.dot_dimension_numbers<[1], [0], [0], [1], [0, 0, 1, 1], [], []>} : vector<16x16xf32>, vector<16x32xf32>, vector<16x32xf32> -> vector<16x32xf32>
    %10 = vector.extract_strided_slice %4 {offsets = [0, 32], sizes = [16, 16], strides = [1, 1]} : vector<16x64xf32> to vector<16x16xf32>
    %cst_11 = arith.constant dense<0.000000e+00> : vector<16x32xf32>
    %11 = tpu.matmul %10, %5, %cst_11 {dimension_numbers = #tpu.dot_dimension_numbers<[1], [0], [0], [1], [0, 0, 1, 1], [], []>} : vector<16x16xf32>, vector<16x32xf32>, vector<16x32xf32> -> vector<16x32xf32>
    %12 = vector.extract_strided_slice %4 {offsets = [0, 48], sizes = [16, 16], strides = [1, 1]} : vector<16x64xf32> to vector<16x16xf32>
    %cst_12 = arith.constant dense<0.000000e+00> : vector<16x32xf32>
    %13 = tpu.matmul %12, %5, %cst_12 {dimension_numbers = #tpu.dot_dimension_numbers<[1], [0], [0], [1], [0, 0, 1, 1], [], []>} : vector<16x16xf32>, vector<16x32xf32>, vector<16x32xf32> -> vector<16x32xf32>
    %c0_13 = arith.constant 0 : index
    %c1 = arith.constant 1 : index
    %c0_14 = arith.constant 0 : index
    %14 = vector.load %arg1[%c0_13, %c1, %c0_14] : memref<16x4x64xf32, #tpu.memory_space<vmem>>, vector<16x1x64xf32>
    %15 = vector.shape_cast %14 : vector<16x1x64xf32> to vector<16x64xf32>
    %c16 = arith.constant 16 : index
    %c0_15 = arith.constant 0 : index
    %16 = vector.load %arg2[%c16, %c0_15] : memref<64x32xf32, #tpu.memory_space<vmem>>, vector<16x32xf32>
    %17 = vector.extract_strided_slice %15 {offsets = [0, 0], sizes = [16, 16], strides = [1, 1]} : vector<16x64xf32> to vector<16x16xf32>
    %cst_16 = arith.constant dense<0.000000e+00> : vector<16x32xf32>
    %18 = tpu.matmul %17, %16, %cst_16 {dimension_numbers = #tpu.dot_dimension_numbers<[1], [0], [0], [1], [0, 0, 1, 1], [], []>} : vector<16x16xf32>, vector<16x32xf32>, vector<16x32xf32> -> vector<16x32xf32>
    %19 = arith.addf %7, %18 : vector<16x32xf32>
    %20 = vector.extract_strided_slice %15 {offsets = [0, 16], sizes = [16, 16], strides = [1, 1]} : vector<16x64xf32> to vector<16x16xf32>
    %cst_17 = arith.constant dense<0.000000e+00> : vector<16x32xf32>
    %21 = tpu.matmul %20, %16, %cst_17 {dimension_numbers = #tpu.dot_dimension_numbers<[1], [0], [0], [1], [0, 0, 1, 1], [], []>} : vector<16x16xf32>, vector<16x32xf32>, vector<16x32xf32> -> vector<16x32xf32>
    %22 = arith.addf %9, %21 : vector<16x32xf32>
    %23 = vector.extract_strided_slice %15 {offsets = [0, 32], sizes = [16, 16], strides = [1, 1]} : vector<16x64xf32> to vector<16x16xf32>
    %cst_18 = arith.constant dense<0.000000e+00> : vector<16x32xf32>
    %24 = tpu.matmul %23, %16, %cst_18 {dimension_numbers = #tpu.dot_dimension_numbers<[1], [0], [0], [1], [0, 0, 1, 1], [], []>} : vector<16x16xf32>, vector<16x32xf32>, vector<16x32xf32> -> vector<16x32xf32>
    %25 = arith.addf %11, %24 : vector<16x32xf32>
    %26 = vector.extract_strided_slice %15 {offsets = [0, 48], sizes = [16, 16], strides = [1, 1]} : vector<16x64xf32> to vector<16x16xf32>
    %cst_19 = arith.constant dense<0.000000e+00> : vector<16x32xf32>
    %27 = tpu.matmul %26, %16, %cst_19 {dimension_numbers = #tpu.dot_dimension_numbers<[1], [0], [0], [1], [0, 0, 1, 1], [], []>} : vector<16x16xf32>, vector<16x32xf32>, vector<16x32xf32> -> vector<16x32xf32>
    %28 = arith.addf %13, %27 : vector<16x32xf32>
    %c0_20 = arith.constant 0 : index
    %c2 = arith.constant 2 : index
    %c0_21 = arith.constant 0 : index
    %29 = vector.load %arg1[%c0_20, %c2, %c0_21] : memref<16x4x64xf32, #tpu.memory_space<vmem>>, vector<16x1x64xf32>
    %30 = vector.shape_cast %29 : vector<16x1x64xf32> to vector<16x64xf32>
    %c32 = arith.constant 32 : index
    %c0_22 = arith.constant 0 : index
    %31 = vector.load %arg2[%c32, %c0_22] : memref<64x32xf32, #tpu.memory_space<vmem>>, vector<16x32xf32>
    %32 = vector.extract_strided_slice %30 {offsets = [0, 0], sizes = [16, 16], strides = [1, 1]} : vector<16x64xf32> to vector<16x16xf32>
    %cst_23 = arith.constant dense<0.000000e+00> : vector<16x32xf32>
    %33 = tpu.matmul %32, %31, %cst_23 {dimension_numbers = #tpu.dot_dimension_numbers<[1], [0], [0], [1], [0, 0, 1, 1], [], []>} : vector<16x16xf32>, vector<16x32xf32>, vector<16x32xf32> -> vector<16x32xf32>
    %34 = arith.addf %19, %33 : vector<16x32xf32>
    %35 = vector.extract_strided_slice %30 {offsets = [0, 16], sizes = [16, 16], strides = [1, 1]} : vector<16x64xf32> to vector<16x16xf32>
    %cst_24 = arith.constant dense<0.000000e+00> : vector<16x32xf32>
    %36 = tpu.matmul %35, %31, %cst_24 {dimension_numbers = #tpu.dot_dimension_numbers<[1], [0], [0], [1], [0, 0, 1, 1], [], []>} : vector<16x16xf32>, vector<16x32xf32>, vector<16x32xf32> -> vector<16x32xf32>
    %37 = arith.addf %22, %36 : vector<16x32xf32>
    %38 = vector.extract_strided_slice %30 {offsets = [0, 32], sizes = [16, 16], strides = [1, 1]} : vector<16x64xf32> to vector<16x16xf32>
    %cst_25 = arith.constant dense<0.000000e+00> : vector<16x32xf32>
    %39 = tpu.matmul %38, %31, %cst_25 {dimension_numbers = #tpu.dot_dimension_numbers<[1], [0], [0], [1], [0, 0, 1, 1], [], []>} : vector<16x16xf32>, vector<16x32xf32>, vector<16x32xf32> -> vector<16x32xf32>
    %40 = arith.addf %25, %39 : vector<16x32xf32>
    %41 = vector.extract_strided_slice %30 {offsets = [0, 48], sizes = [16, 16], strides = [1, 1]} : vector<16x64xf32> to vector<16x16xf32>
    %cst_26 = arith.constant dense<0.000000e+00> : vector<16x32xf32>
    %42 = tpu.matmul %41, %31, %cst_26 {dimension_numbers = #tpu.dot_dimension_numbers<[1], [0], [0], [1], [0, 0, 1, 1], [], []>} : vector<16x16xf32>, vector<16x32xf32>, vector<16x32xf32> -> vector<16x32xf32>
    %43 = arith.addf %28, %42 : vector<16x32xf32>
    %c0_27 = arith.constant 0 : index
    %c3 = arith.constant 3 : index
    %c0_28 = arith.constant 0 : index
    %44 = vector.load %arg1[%c0_27, %c3, %c0_28] : memref<16x4x64xf32, #tpu.memory_space<vmem>>, vector<16x1x64xf32>
    %45 = vector.shape_cast %44 : vector<16x1x64xf32> to vector<16x64xf32>
    %c48 = arith.constant 48 : index
    %c0_29 = arith.constant 0 : index
    %46 = vector.load %arg2[%c48, %c0_29] : memref<64x32xf32, #tpu.memory_space<vmem>>, vector<16x32xf32>
    %47 = vector.extract_strided_slice %45 {offsets = [0, 0], sizes = [16, 16], strides = [1, 1]} : vector<16x64xf32> to vector<16x16xf32>
    %cst_30 = arith.constant dense<0.000000e+00> : vector<16x32xf32>
    %48 = tpu.matmul %47, %46, %cst_30 {dimension_numbers = #tpu.dot_dimension_numbers<[1], [0], [0], [1], [0, 0, 1, 1], [], []>} : vector<16x16xf32>, vector<16x32xf32>, vector<16x32xf32> -> vector<16x32xf32>
    %49 = arith.addf %34, %48 : vector<16x32xf32>
    %50 = vector.extract_strided_slice %45 {offsets = [0, 16], sizes = [16, 16], strides = [1, 1]} : vector<16x64xf32> to vector<16x16xf32>
    %cst_31 = arith.constant dense<0.000000e+00> : vector<16x32xf32>
    %51 = tpu.matmul %50, %46, %cst_31 {dimension_numbers = #tpu.dot_dimension_numbers<[1], [0], [0], [1], [0, 0, 1, 1], [], []>} : vector<16x16xf32>, vector<16x32xf32>, vector<16x32xf32> -> vector<16x32xf32>
    %52 = arith.addf %37, %51 : vector<16x32xf32>
    %53 = vector.extract_strided_slice %45 {offsets = [0, 32], sizes = [16, 16], strides = [1, 1]} : vector<16x64xf32> to vector<16x16xf32>
    %cst_32 = arith.constant dense<0.000000e+00> : vector<16x32xf32>
    %54 = tpu.matmul %53, %46, %cst_32 {dimension_numbers = #tpu.dot_dimension_numbers<[1], [0], [0], [1], [0, 0, 1, 1], [], []>} : vector<16x16xf32>, vector<16x32xf32>, vector<16x32xf32> -> vector<16x32xf32>
    %55 = arith.addf %40, %54 : vector<16x32xf32>
    %56 = vector.extract_strided_slice %45 {offsets = [0, 48], sizes = [16, 16], strides = [1, 1]} : vector<16x64xf32> to vector<16x16xf32>
    %cst_33 = arith.constant dense<0.000000e+00> : vector<16x32xf32>
    %57 = tpu.matmul %56, %46, %cst_33 {dimension_numbers = #tpu.dot_dimension_numbers<[1], [0], [0], [1], [0, 0, 1, 1], [], []>} : vector<16x16xf32>, vector<16x32xf32>, vector<16x32xf32> -> vector<16x32xf32>
    %58 = arith.addf %43, %57 : vector<16x32xf32>
    %59 = vector.broadcast %0 : vector<1x32xf32> to vector<16x32xf32>
    %60 = arith.addf %49, %59 : vector<16x32xf32>
    %cst_34 = arith.constant 0.000000e+00 : f32
    %61 = vector.broadcast %cst_34 : f32 to vector<16x32xf32>
    %62 = arith.maximumf %60, %61 : vector<16x32xf32>
    %cst_35 = arith.constant dense<0.000000e+00> : vector<16x8xf32>
    %63 = tpu.matmul %62, %1, %cst_35 {dimension_numbers = #tpu.dot_dimension_numbers<[1], [0], [0], [1], [0, 0, 1, 1], [], []>} : vector<16x32xf32>, vector<32x8xf32>, vector<16x8xf32> -> vector<16x8xf32>
    %64 = vector.broadcast %2 : vector<1x8xf32> to vector<16x8xf32>
    %65 = arith.addf %63, %64 : vector<16x8xf32>
    %c0_36 = arith.constant 0 : index
    %c0_37 = arith.constant 0 : index
    %66 = vector.load %arg6[%c0_36, %c0_37] : memref<16x32xf32, #tpu.memory_space<vmem>>, vector<16x8xf32>
    tpu.vector_store %arg6[%c0_36, %c0_37], %65 {strides = array<i32>} : memref<16x32xf32, #tpu.memory_space<vmem>>, vector<16x8xf32>,
    %67 = vector.broadcast %0 : vector<1x32xf32> to vector<16x32xf32>
    %68 = arith.addf %52, %67 : vector<16x32xf32>
    %cst_38 = arith.constant 0.000000e+00 : f32
    %69 = vector.broadcast %cst_38 : f32 to vector<16x32xf32>
    %70 = arith.maximumf %68, %69 : vector<16x32xf32>
    %cst_39 = arith.constant dense<0.000000e+00> : vector<16x8xf32>
    %71 = tpu.matmul %70, %1, %cst_39 {dimension_numbers = #tpu.dot_dimension_numbers<[1], [0], [0], [1], [0, 0, 1, 1], [], []>} : vector<16x32xf32>, vector<32x8xf32>, vector<16x8xf32> -> vector<16x8xf32>
    %72 = vector.broadcast %2 : vector<1x8xf32> to vector<16x8xf32>
    %73 = arith.addf %71, %72 : vector<16x8xf32>
    %c0_40 = arith.constant 0 : index
    %c8 = arith.constant 8 : index
    %74 = vector.load %arg6[%c0_40, %c8] : memref<16x32xf32, #tpu.memory_space<vmem>>, vector<16x8xf32>
    tpu.vector_store %arg6[%c0_40, %c8], %73 {strides = array<i32>} : memref<16x32xf32, #tpu.memory_space<vmem>>, vector<16x8xf32>,
    %75 = vector.broadcast %0 : vector<1x32xf32> to vector<16x32xf32>
    %76 = arith.addf %55, %75 : vector<16x32xf32>
    %cst_41 = arith.constant 0.000000e+00 : f32
    %77 = vector.broadcast %cst_41 : f32 to vector<16x32xf32>
    %78 = arith.maximumf %76, %77 : vector<16x32xf32>
    %cst_42 = arith.constant dense<0.000000e+00> : vector<16x8xf32>
    %79 = tpu.matmul %78, %1, %cst_42 {dimension_numbers = #tpu.dot_dimension_numbers<[1], [0], [0], [1], [0, 0, 1, 1], [], []>} : vector<16x32xf32>, vector<32x8xf32>, vector<16x8xf32> -> vector<16x8xf32>
    %80 = vector.broadcast %2 : vector<1x8xf32> to vector<16x8xf32>
    %81 = arith.addf %79, %80 : vector<16x8xf32>
    %c0_43 = arith.constant 0 : index
    %c16_44 = arith.constant 16 : index
    %82 = vector.load %arg6[%c0_43, %c16_44] : memref<16x32xf32, #tpu.memory_space<vmem>>, vector<16x8xf32>
    tpu.vector_store %arg6[%c0_43, %c16_44], %81 {strides = array<i32>} : memref<16x32xf32, #tpu.memory_space<vmem>>, vector<16x8xf32>,
    %83 = vector.broadcast %0 : vector<1x32xf32> to vector<16x32xf32>
    %84 = arith.addf %58, %83 : vector<16x32xf32>
    %cst_45 = arith.constant 0.000000e+00 : f32
    %85 = vector.broadcast %cst_45 : f32 to vector<16x32xf32>
    %86 = arith.maximumf %84, %85 : vector<16x32xf32>
    %cst_46 = arith.constant dense<0.000000e+00> : vector<16x8xf32>
    %87 = tpu.matmul %86, %1, %cst_46 {dimension_numbers = #tpu.dot_dimension_numbers<[1], [0], [0], [1], [0, 0, 1, 1], [], []>} : vector<16x32xf32>, vector<32x8xf32>, vector<16x8xf32> -> vector<16x8xf32>
    %88 = vector.broadcast %2 : vector<1x8xf32> to vector<16x8xf32>
    %89 = arith.addf %87, %88 : vector<16x8xf32>
    %c0_47 = arith.constant 0 : index
    %c24 = arith.constant 24 : index
    %90 = vector.load %arg6[%c0_47, %c24] : memref<16x32xf32, #tpu.memory_space<vmem>>, vector<16x8xf32>
    tpu.vector_store %arg6[%c0_47, %c24], %89 {strides = array<i32>} : memref<16x32xf32, #tpu.memory_space<vmem>>, vector<16x8xf32>,
    return
  }
  func.func @transform_0(%arg0: i32) -> (i32, i32, i32) {
    %c0_i32 = arith.constant 0 : i32
    %c0_i32_0 = arith.constant 0 : i32
    %c0_i32_1 = arith.constant 0 : i32
    return %arg0, %c0_i32, %c0_i32_0 : i32, i32, i32
  }
  func.func @transform_1(%arg0: i32) -> (i32, i32) {
    %c0_i32 = arith.constant 0 : i32
    %c0_i32_0 = arith.constant 0 : i32
    %c0_i32_1 = arith.constant 0 : i32
    return %c0_i32, %c0_i32_0 : i32, i32
  }
  func.func @transform_2(%arg0: i32) -> (i32, i32) {
    %c0_i32 = arith.constant 0 : i32
    %c0_i32_0 = arith.constant 0 : i32
    %c0_i32_1 = arith.constant 0 : i32
    return %c0_i32, %c0_i32_0 : i32, i32
  }
  func.func @transform_3(%arg0: i32) -> (i32, i32) {
    %c0_i32 = arith.constant 0 : i32
    %c0_i32_0 = arith.constant 0 : i32
    %c0_i32_1 = arith.constant 0 : i32
    return %c0_i32, %c0_i32_0 : i32, i32
  }
  func.func @transform_4(%arg0: i32) -> (i32, i32) {
    %c0_i32 = arith.constant 0 : i32
    %c0_i32_0 = arith.constant 0 : i32
    %c0_i32_1 = arith.constant 0 : i32
    return %c0_i32, %c0_i32_0 : i32, i32
  }
  func.func @transform_5(%arg0: i32) -> (i32, i32) {
    %c0_i32 = arith.constant 0 : i32
    %c0_i32_0 = arith.constant 0 : i32
    return %arg0, %c0_i32 : i32, i32
  }
}

</mosaic_0001>

<bundles_post_ra>
// kernel: patchwise_mlp_forward.1
= control target key start
LH: loop header
LB: loop body
LE: loop exit
PB: predicated region body
PF: predicated region fallthrough
CT: control target
= control target key end

     0   :  { %s3095_s18 = smov 0   ;;  %s3097_s19 = smov 0   ;;  %s3474_s0 = inlined_call_operand.vmem [shape: f32[24,4,64], index: 0, kind: input, shape index: {}]   ;;  %s3475_s1 = inlined_call_operand.vmem [shape: f32[64,32], index: 1, kind: input, shape index: {}]   ;;  %s3476_s2 = inlined_call_operand.vmem [shape: f32[1,32], index: 2, kind: input, shape index: {}]   ;;  %s3477_s3 = inlined_call_operand.vmem [shape: f32[32,8], index: 3, kind: input, shape index: {}]   ;;  %s3478_s4 = inlined_call_operand.vmem [shape: f32[1,8], index: 4, kind: input, shape index: {}]   ;;  %s3479_s5 = inlined_call_operand.vmem [shape: f32[24,32], index: 5, kind: output, shape index: {}]  }
   0x1   :  { %s3099_s20 = smov 0  }
   0x2 LB: > { %s3108_s21 = sadd.s32 4294967295, %s3025_s20   ;;  %s3110_s22 = sadd.s32 1, %s3025_s20   ;;  %s3025_s20 = sphi %s3099_s20, %s3483_s20   ;;  %s3021_s19 = sphi %s3097_s19, %s3482_s19   ;;  %s3017_s18 = sphi %s3095_s18, %s3481_s18  }
   0x3   : > { %s129_s23 = ssub.s32 %s3025_s20, %s3110_s22  ;;  %s132_s24 = sadd.s32 1, %s3021_s19 }
   0x4   : > { %p130_p0 = scmp.eq.s32.totalorder %s129_s23, 0  ;;  %p142_p1 = scmp.ne.s32.totalorder %s3021_s19, %s3017_s18 }
   0x5   : > { %p143_p2 = scmp.eq.s32.totalorder %s3108_s21, 1  ;;  %p2447_p3 = scmp.ge.s32.totalorder %s3025_s20, 1 }
   0x6   : > { %s3118_s25 = scalar_select %p130_p0, %s3021_s19, %s132_s24  }
   0x7   : > { %p3120_p4 = por %p143_p2, %p142_p1  ;;  %p196_p5 = scmp.lt.s32.totalorder %s3025_s20, 3 }
   0x9   : > { %p197_p6 = pnand %p2447_p3, %p196_p5 }
   0xa   : > { %s3125_s27 = sshll.u32 (!%p197_p6), %s3108_s21, 4  ;;  %v286_v0 = vld [vmem:[%s3475_s1 + $0x10] sm:$0xff] (!%p197_p6)  ;;  %v287_v1 = vld [vmem:[%s3475_s1 + $0x18] sm:$0xff] (!%p197_p6)  ;;  %vm305_vm0 = vcmask (!%p197_p6), 1041409   ;;  %vm308_vm1 = vcmask (!%p197_p6), 1042434   ;;  %vm311_vm2 = vcmask (!%p197_p6), 1043459  }
   0xb   : > { %200 = sbr.rel (%p197_p6) target bundleno = 802 (0x322), region = 40  ;;  %p232_p7 = scmp.lt.s32.totalorder (!%p197_p6), %s3125_s27, 23  ;;  %v3135_v2 = vpack.c.bf16 (!%p197_p6), %v287_v1, %v286_v0  ;;  %vm314_vm3 = vcmask (!%p197_p6), 1044484   ;;  %vm317_vm4 = vcmask (!%p197_p6), 1045509   ;;  %vm320_vm5 = vcmask (!%p197_p6), 1046534   ;;  %v268_v22 = vld [vmem:[%s3475_s1] sm:$0xff] (!%p197_p6) }
   0xc   : > { %vm323_vm6 = vcmask (!%p197_p6), 1047559   ;;  %vm339_vm7 = vcmask (!%p197_p6), 130048   ;;  %v269_v37 = vld [vmem:[%s3475_s1 + $0x8] sm:$0xff] (!%p197_p6)  ;;  %s3059_s16 = smov (!%p197_p6), 112   ;;  %s3060_s17 = smov (!%p197_p6), 96   ;;  %vm1852_vm8 = vcmask (!%p197_p6), 261120  }
   0xd   : > { %2758 = vmatprep.subr.bf16.mxu0 (!%p197_p6), %v3135_v2  ;;  %2766 = vmatprep.subr.bf16.mxu1 (!%p197_p6), %v3135_v2  ;;  %v3182_v49 = vpack.c.bf16 (!%p197_p6), %v269_v37, %v268_v22  ;;  %s3061_s20 = smov (!%p197_p6), 80   ;;  %s224_s23 = sand.u32 (!%p197_p6), 1, %s3017_s18   ;;  %vm1934_vm9 = vcmask (!%p197_p6), 64512   ;;  %vm2030_vm10 = vcmask (!%p197_p6), 130112   ;;  %vm2126_vm11 = vcmask (!%p197_p6), 195712  }
   0xe   : > { %2760 = vmatpush3.bf16.msra.mxu0 (!%p197_p6), %v3135_v2  ;;  %2768 = vmatpush3.bf16.msra.mxu1 (!%p197_p6), %v3135_v2  ;;  %s2448_s24 = sshll.u32 (!%p197_p6), %s224_s23, 4  ;;  %s3062_s18 = smov (!%p197_p6), 16   ;;  %vm2222_vm12 = vcmask (!%p197_p6), 261312  }
   0xf   : > { %2762 = vmatprep.subr.bf16.mxu0 (!%p197_p6), %v3182_v49  ;;  %2770 = vmatprep.subr.bf16.mxu1 (!%p197_p6), %v3182_v49  ;;  %s3423_s30 = scalar_lea.vmem (!%p197_p6), [#allocation2], %s2448_s24   ;;  %s3063_s6 = smov (!%p197_p6), 8  }
  0x12   : > { %s233_s7 = scalar_select %p232_p7, %s3125_s27, 23 }
  0x14   : > { %s2450_s8 = sshll.u32 %s233_s7, 2  ;;  %s3064_s7 = smov 24  }
  0x15   : > { %s3142_s11 = scalar_lea.vmem %s3474_s0, %s2450_s8  ;;  %s2494_s8 = sshll.u32 (%p3120_p4), %s3108_s21, 1 }
  0x16   : > { %v270_v3 = vld [vmem:[%s3142_s11 + $0x1] sm:$0x1]  ;;  %v271_v4 = vld [vmem:[%s3142_s11 + $0x5] sm:$0x1]  ;;  %v272_v5 = vld [vmem:[%s3142_s11 + $0x9] sm:$0x1] }
  0x17   : > { %v273_v6 = vld [vmem:[%s3142_s11 + $0xd] sm:$0x1]  ;;  %v274_v7 = vld [vmem:[%s3142_s11 + $0x11] sm:$0x1]  ;;  %v275_v8 = vld [vmem:[%s3142_s11 + $0x15] sm:$0x1] }
  0x18   : > { %v276_v9 = vld [vmem:[%s3142_s11 + $0x19] sm:$0x1]  ;;  %v277_v10 = vld [vmem:[%s3142_s11 + $0x1d] sm:$0x1]  ;;  %v304_v11 = vrot.slane %v271_v4, 7  ;;  %v307_v12 = vrot.slane %v272_v5, 6 }
  0x19   : > { %v310_v13 = vrot.slane %v273_v6, 5  ;;  %v313_v14 = vrot.slane %v274_v7, 4  ;;  %v316_v15 = vrot.slane %v275_v8, 3  ;;  %v319_v16 = vrot.slane %v276_v9, 2  ;;  %v252_v17 = vld [vmem:[%s3142_s11] sm:$0x1] }
  0x1a   : > { %v306_v18 = vsel %vm305_vm0, %v304_v11, %v270_v3  ;;  %v322_v19 = vrot.slane %v277_v10, 1  ;;  %v253_v20 = vld [vmem:[%s3142_s11 + $0x4] sm:$0x1]  ;;  %v254_v21 = vld [vmem:[%s3142_s11 + $0x8] sm:$0x1]  ;;  %s2233_s12 = ssub.s32 (%p3120_p4), 3, %s2494_s8 }
  0x1b   : > { %v309_v23 = vsel %vm308_vm1, %v307_v12, %v306_v18  ;;  %v255_v24 = vld [vmem:[%s3142_s11 + $0xc] sm:$0x1]  ;;  %v256_v25 = vld [vmem:[%s3142_s11 + $0x10] sm:$0x1]  ;;  %v257_v26 = vld [vmem:[%s3142_s11 + $0x14] sm:$0x1] }
  0x1c   : > { %v312_v27 = vsel %vm311_vm2, %v310_v13, %v309_v23  ;;  %v258_v28 = vld [vmem:[%s3142_s11 + $0x18] sm:$0x1]  ;;  %v259_v29 = vld [vmem:[%s3142_s11 + $0x1c] sm:$0x1]  ;;  %v435_v30 = vrot.slane %v253_v20, 7  ;;  %v437_v31 = vrot.slane %v254_v21, 6 }
  0x1d   : > { %v315_v32 = vsel %vm314_vm3, %v313_v14, %v312_v27  ;;  %v439_v33 = vrot.slane %v255_v24, 5  ;;  %v441_v34 = vrot.slane %v256_v25, 4  ;;  %v443_v35 = vrot.slane %v257_v26, 3  ;;  %v278_v36 = vld [vmem:[%s3142_s11 + $0x21] sm:$0x1]  ;;  %p2234_p8 = scmp.lt.s32.totalorder (%p3120_p4), %s2233_s12, 2 }
  0x1e   : > { %v318_v38 = vsel %vm317_vm4, %v316_v15, %v315_v32  ;;  %v436_v39 = vsel %vm305_vm0, %v435_v30, %v252_v17  ;;  %v445_v40 = vrot.slane %v258_v28, 2  ;;  %v447_v41 = vrot.slane %v259_v29, 1  ;;  %v279_v42 = vld [vmem:[%s3142_s11 + $0x25] sm:$0x1]  ;;  %v280_v43 = vld [vmem:[%s3142_s11 + $0x29] sm:$0x1] }
  0x1f   : > { %v321_v44 = vsel %vm320_vm5, %v319_v16, %v318_v38  ;;  %v438_v45 = vsel %vm308_vm1, %v437_v31, %v436_v39  ;;  %v281_v46 = vld [vmem:[%s3142_s11 + $0x2d] sm:$0x1]  ;;  %v282_v47 = vld [vmem:[%s3142_s11 + $0x31] sm:$0x1]  ;;  %v283_v48 = vld [vmem:[%s3142_s11 + $0x35] sm:$0x1] }
  0x20   : > { %v3185_v50 = vsel %vm323_vm6, %v322_v19, %v321_v44  ;;  %v440_v51 = vsel %vm311_vm2, %v439_v33, %v438_v45  ;;  %v284_v52 = vld [vmem:[%s3142_s11 + $0x39] sm:$0x1]  ;;  %v285_v53 = vld [vmem:[%s3142_s11 + $0x3d] sm:$0x1]  ;;  %v325_v54 = vrot.slane %v279_v42, 7  ;;  %v327_v55 = vrot.slane %v280_v43, 6 }
  0x21   : > { %542 = vrot.lane.b32.xlu0 %v3185_v50, %s3059_s16  ;;  %v442_v56 = vsel %vm314_vm3, %v441_v34, %v440_v51  ;;  %v329_v57 = vrot.slane %v281_v46, 5  ;;  %v331_v58 = vrot.slane %v282_v47, 4  ;;  %v333_v59 = vrot.slane %v283_v48, 3  ;;  %v260_v60 = vld [vmem:[%s3142_s11 + $0x20] sm:$0x1]  ;;  %2605 = vmatprep.mubr.msk.f32.mxu0 %vm339_vm7, %v3185_v50 }
  0x22   : > { %v444_v61 = vsel %vm317_vm4, %v443_v35, %v442_v56  ;;  %v326_v62 = vsel %vm305_vm0, %v325_v54, %v278_v36  ;;  %v335_v63 = vrot.slane %v284_v52, 2  ;;  %v337_v0 = vrot.slane %v285_v53, 1  ;;  %v261_v1 = vld [vmem:[%s3142_s11 + $0x24] sm:$0x1]  ;;  %v262_v3 = vld [vmem:[%s3142_s11 + $0x28] sm:$0x1] }
  0x23   : > { %v446_v4 = vsel %vm320_vm5, %v445_v40, %v444_v61  ;;  %v328_v5 = vsel %vm308_vm1, %v327_v55, %v326_v62  ;;  %v263_v6 = vld [vmem:[%s3142_s11 + $0x2c] sm:$0x1]  ;;  %v264_v7 = vld [vmem:[%s3142_s11 + $0x30] sm:$0x1]  ;;  %v265_v8 = vld [vmem:[%s3142_s11 + $0x34] sm:$0x1] }
  0x24   : > { %v3208_v9 = vsel %vm323_vm6, %v447_v41, %v446_v4  ;;  %v330_v10 = vsel %vm311_vm2, %v329_v57, %v328_v5  ;;  %v266_v11 = vld [vmem:[%s3142_s11 + $0x38] sm:$0x1]  ;;  %v267_v12 = vld [vmem:[%s3142_s11 + $0x3c] sm:$0x1]  ;;  %v449_v13 = vrot.slane %v261_v1, 7  ;;  %v451_v14 = vrot.slane %v262_v3, 6 }
  0x25   : > { %625 = vrot.lane.b32.xlu1 %v3208_v9, %s3059_s16  ;;  %v332_v15 = vsel %vm314_vm3, %v331_v58, %v330_v10  ;;  %v453_v16 = vrot.slane %v263_v6, 5  ;;  %v455_v17 = vrot.slane %v264_v7, 4  ;;  %v457_v20 = vrot.slane %v265_v8, 3  ;;  %v1041_v21 = vld [vmem:[%s3142_s11 + $0x6] sm:$0x1] }
  0x26   : > { %v334_v18 = vsel %vm317_vm4, %v333_v59, %v332_v15  ;;  %v450_v19 = vsel %vm305_vm0, %v449_v13, %v260_v60  ;;  %v1042_v22 = vld [vmem:[%s3142_s11 + $0xa] sm:$0x1]  ;;  %v459_v25 = vrot.slane %v266_v11, 2  ;;  %v461_v26 = vrot.slane %v267_v12, 1  ;;  %v1040_v27 = vld [vmem:[%s3142_s11 + $0x2] sm:$0x1] }
  0x27   : > { %v336_v23 = vsel %vm320_vm5, %v335_v63, %v334_v18  ;;  %v452_v24 = vsel %vm308_vm1, %v451_v14, %v450_v19  ;;  %v1043_v28 = vld [vmem:[%s3142_s11 + $0xe] sm:$0x1]  ;;  %v1074_v31 = vrot.slane %v1041_v21, 7  ;;  %v1076_v32 = vrot.slane %v1042_v22, 6  ;;  %v1044_v34 = vld [vmem:[%s3142_s11 + $0x12] sm:$0x1] }
  0x28   : > { %v338_v29 = vsel %vm323_vm6, %v337_v0, %v336_v23  ;;  %v454_v30 = vsel %vm311_vm2, %v453_v16, %v452_v24  ;;  %v1078_v37 = vrot.slane %v1043_v28, 5  ;;  %v1049_v38 = vld [vmem:[%s3142_s11 + $0x26] sm:$0x1]  ;;  %v1050_v39 = vld [vmem:[%s3142_s11 + $0x2a] sm:$0x1]  ;;  %v1080_v48 = vrot.slane %v1044_v34, 4 }
  0x29   : > { %544 = vrot.lane.b32.xlu0 %v338_v29, %s3059_s16  ;;  %v456_v33 = vsel %vm314_vm3, %v455_v17, %v454_v30  ;;  %2606 = vmatmul.mubr.msk.f32.vlgmr.msra.gmra.mrb[0].mxu0 %vm339_vm7, %v338_v29  ;;  %v1075_v36 = vsel %vm305_vm0, %v1074_v31, %v1040_v27  ;;  %v1048_v42 = vld [vmem:[%s3142_s11 + $0x22] sm:$0x1]  ;;  %v1051_v43 = vld [vmem:[%s3142_s11 + $0x2e] sm:$0x1]  ;;  %v1088_v45 = vrot.slane %v1049_v38, 7  ;;  %v1090_v46 = vrot.slane %v1050_v39, 6 }
  0x2a   : > { %v458_v35 = vsel %vm317_vm4, %v457_v20, %v456_v33  ;;  %2764 = vmatpush3.bf16.msra.mxu0 %v3182_v49  ;;  %2612 = vmatprep.mubr.msk.f32.mxu0 %vm339_vm7, %v3208_v9  ;;  %v1077_v41 = vsel %vm308_vm1, %v1076_v32, %v1075_v36  ;;  %v1045_v47 = vld [vmem:[%s3142_s11 + $0x16] sm:$0x1]  ;;  %v1052_v52 = vld [vmem:[%s3142_s11 + $0x32] sm:$0x1]  ;;  %v1092_v54 = vrot.slane %v1051_v43, 5 }
  0x2b   : > { %v460_v40 = vsel %vm320_vm5, %v459_v25, %v458_v35  ;;  %2774 = vmatprep.subr.bf16.mxu0 %v3135_v2  ;;  %v1079_v51 = vsel %vm311_vm2, %v1078_v37, %v1077_v41  ;;  %v1089_v53 = vsel %vm305_vm0, %v1088_v45, %v1048_v42  ;;  %v1439_v55 = vld [vmem:[%s3142_s11 + $0x7] sm:$0x1]  ;;  %v1046_v57 = vld [vmem:[%s3142_s11 + $0x1a] sm:$0x1]  ;;  %v1082_v58 = vrot.slane %v1045_v47, 3 }
  0x2c   : > { %v3243_v44 = vsel %vm323_vm6, %v461_v26, %v460_v40  ;;  %v1091_v56 = vsel %vm308_vm1, %v1090_v46, %v1089_v53  ;;  %v1440_v59 = vld [vmem:[%s3142_s11 + $0xb] sm:$0x1]  ;;  %v1472_v60 = vrot.slane %v1439_v55, 7  ;;  %v1081_v61 = vsel %vm314_vm3, %v1080_v48, %v1079_v51  ;;  %v1053_v62 = vld [vmem:[%s3142_s11 + $0x36] sm:$0x1] }
  0x2d   : > { %627 = vrot.lane.b32.xlu1 %v3243_v44, %s3059_s16  ;;  %708 = vrot.lane.b32.xlu0 %v3185_v50, %s3060_s17  ;;  %v1094_v63 = vrot.slane %v1052_v52, 4  ;;  %v1438_v0 = vld [vmem:[%s3142_s11 + $0x3] sm:$0x1]  ;;  %v1093_v1 = vsel %vm311_vm2, %v1092_v54, %v1091_v56  ;;  %v1447_v3 = vld [vmem:[%s3142_s11 + $0x27] sm:$0x1]  ;;  %v1084_v5 = vrot.slane %v1046_v57, 2 }
  0x2e   : > { %v1047_v4 = vld [vmem:[%s3142_s11 + $0x1e] sm:$0x1]  ;;  %v1441_v6 = vld [vmem:[%s3142_s11 + $0xf] sm:$0x1]  ;;  %v1474_v7 = vrot.slane %v1440_v59, 6  ;;  %v1096_v10 = vrot.slane %v1053_v62, 3  ;;  %v1473_v11 = vsel %vm305_vm0, %v1472_v60, %v1438_v0 }
  0x2f   : > { %v1054_v8 = vld [vmem:[%s3142_s11 + $0x3a] sm:$0x1]  ;;  %v1448_v12 = vld [vmem:[%s3142_s11 + $0x2b] sm:$0x1]  ;;  %v1486_v13 = vrot.slane %v1447_v3, 7  ;;  %v1095_v14 = vsel %vm314_vm3, %v1094_v63, %v1093_v1  ;;  %v1086_v16 = vrot.slane %v1047_v4, 1 }
  0x30   : > { %v1446_v15 = vld [vmem:[%s3142_s11 + $0x23] sm:$0x1]  ;;  %v1442_v17 = vld [vmem:[%s3142_s11 + $0x13] sm:$0x1]  ;;  %v1476_v18 = vrot.slane %v1441_v6, 5  ;;  %v1098_v21 = vrot.slane %v1054_v8, 2  ;;  %v1475_v22 = vsel %vm308_vm1, %v1474_v7, %v1473_v11  ;;  %v1097_v25 = vsel %vm317_vm4, %v1096_v10, %v1095_v14 }
  0x31   : > { %710 = vrot.lane.b32.xlu1 %v338_v29, %s3060_s17  ;;  %874 = vrot.lane.b32.xlu0 %v3185_v50, %s3061_s20  ;;  %v1083_v50 = vsel %vm317_vm4, %v1082_v58, %v1081_v61  ;;  %v1055_v20 = vld [vmem:[%s3142_s11 + $0x3e] sm:$0x1]  ;;  %v1449_v23 = vld [vmem:[%s3142_s11 + $0x2f] sm:$0x1]  ;;  %v1488_v24 = vrot.slane %v1448_v12, 6  ;;  %v1487_v26 = vsel %vm305_vm0, %v1486_v13, %v1446_v15  ;;  %v1478_v28 = vrot.slane %v1442_v17, 4 }
  0x32   : > { %2613 = vmatmul.mubr.msk.f32.vlgmr.msra.gmra.mrb[0].mxu0 %vm339_vm7, %v3243_v44  ;;  %v1085_v19 = vsel %vm320_vm5, %v1084_v5, %v1083_v50  ;;  %v1443_v27 = vld [vmem:[%s3142_s11 + $0x17] sm:$0x1]  ;;  %v1100_v30 = vrot.slane %v1055_v20, 1  ;;  %v1477_v31 = vsel %vm311_vm2, %v1476_v18, %v1475_v22  ;;  %v1450_v32 = vld [vmem:[%s3142_s11 + $0x33] sm:$0x1]  ;;  %v1490_v33 = vrot.slane %v1449_v23, 5 }
  0x33   : > { %2776 = vmatpush3.bf16.msra.mxu0 %v3135_v2  ;;  %v1099_v34 = vsel %vm320_vm5, %v1098_v21, %v1097_v25  ;;  %v1489_v35 = vsel %vm308_vm1, %v1488_v24, %v1487_v26  ;;  %v1444_v36 = vld [vmem:[%s3142_s11 + $0x1b] sm:$0x1]  ;;  %v1480_v37 = vrot.slane %v1443_v27, 3  ;;  %v1451_v38 = vld [vmem:[%s3142_s11 + $0x37] sm:$0x1]  ;;  %v1492_v39 = vrot.slane %v1450_v32, 4 }
  0x34   : > { %2778 = vmatprep.subr.bf16.mxu0 %v3182_v49  ;;  %v3307_v40 = vsel %vm323_vm6, %v1100_v30, %v1099_v34  ;;  %v1491_v41 = vsel %vm311_vm2, %v1490_v33, %v1489_v35  ;;  %v1445_v42 = vld [vmem:[%s3142_s11 + $0x1f] sm:$0x1]  ;;  %v1482_v43 = vrot.slane %v1444_v36, 2  ;;  %v1452_v46 = vld [vmem:[%s3142_s11 + $0x3b] sm:$0x1]  ;;  %v1494_v47 = vrot.slane %v1451_v38, 3 }
  0x35   : > { %876 = vrot.lane.b32.xlu1 %v338_v29, %s3061_s20  ;;  %791 = vrot.lane.b32.xlu0 %v3208_v9, %s3060_s17  ;;  %v3293_v29 = vsel %vm323_vm6, %v1086_v16, %v1085_v19  ;;  %v1484_v48 = vrot.slane %v1445_v42, 1  ;;  %v1453_v52 = vld [vmem:[%s3142_s11 + $0x3f] sm:$0x1]  ;;  %v1496_v53 = vrot.slane %v1452_v46, 2  ;;  %v1056_v0 = vld [vmem:[%s3475_s1 + $0x20] sm:$0xff]  ;;  %s3440_s11 = scalar_lea.vmem (%p3120_p4), %s3479_s5, %s3125_s27  }
  0x36   : > { %v1498_v56 = vrot.slane %v1453_v52, 1  ;;  %v1057_v1 = vld [vmem:[%s3475_s1 + $0x28] sm:$0xff]  ;;  %v1455_v10 = vld [vmem:[%s3475_s1 + $0x38] sm:$0xff]  ;;  %v247_v17 = vld [vmem:[%s3477_s3] sm:$0xff] }
  0x37   : > { %v2789_v5 = vpack.c.bf16 %v1057_v1, %v1056_v0  ;;  %v248_v18 = vld [vmem:[%s3477_s3 + $0x8] sm:$0xff]  ;;  %v249_v27 = vld [vmem:[%s3477_s3 + $0x10] sm:$0xff]  ;;  %v2483_v30 = vld [vmem:[%s3476_s2] ss:$0 sm:$0xff] }
  0x38   : > { %v2821_v21 = vpack.c.bf16 %v248_v18, %v247_v17 }
  0x39   : > { %793 = vrot.lane.b32.xlu1 %v3243_v44, %s3060_s17  ;;  %957 = vrot.lane.b32.xlu0 %v3208_v9, %s3061_s20  ;;  %v1479_v9 = vsel %vm314_vm3, %v1478_v28, %v1477_v31  ;;  %v250_v28 = vld [vmem:[%s3477_s3 + $0x18] sm:$0xff] }
  0x3a   : > { %v1481_v45 = vsel %vm317_vm4, %v1480_v37, %v1479_v9 }
  0x3b   : > { %v1483_v51 = vsel %vm320_vm5, %v1482_v43, %v1481_v45 }
  0x3c   : > { %v3326_v55 = vsel %vm323_vm6, %v1484_v48, %v1483_v51 }
  0x3d   : > { %959 = vrot.lane.b32.xlu1 %v3243_v44, %s3061_s20  ;;  %1183 = vrot.lane.b32.xlu0 %v3293_v29, %s3059_s16  ;;  %v1493_v44 = vsel %vm314_vm3, %v1492_v39, %v1491_v41 }
  0x3e   : > { %v1495_v54 = vsel %vm317_vm4, %v1494_v47, %v1493_v44 }
  0x3f   : > { %v1497_v57 = vsel %vm320_vm5, %v1496_v53, %v1495_v54 }
  0x40   : > { %v3334_v58 = vsel %vm323_vm6, %v1498_v56, %v1497_v57  ;;  %v2484_v56 = vld [vmem:[%s3478_s4] ss:$0 sm:$0xff] }
  0x41   : > { %1185 = vrot.lane.b32.xlu1 %v3307_v40, %s3059_s16  ;;  %1268 = vrot.lane.b32.xlu0 %v3293_v29, %s3060_s17 }
  0x45   : > { %1270 = vrot.lane.b32.xlu1 %v3307_v40, %s3060_s17  ;;  %1353 = vrot.lane.b32.xlu0 %v3293_v29, %s3061_s20 }
  0x49   : > { %1355 = vrot.lane.b32.xlu1 %v3307_v40, %s3061_s20  ;;  %1581 = vrot.lane.b32.xlu0 %v3326_v55, %s3059_s16 }
  0x4d   : > { %1583 = vrot.lane.b32.xlu1 %v3334_v58, %s3059_s16  ;;  %1666 = vrot.lane.b32.xlu0 %v3326_v55, %s3060_s17 }
  0x51   : > { %1668 = vrot.lane.b32.xlu1 %v3334_v58, %s3060_s17  ;;  %1751 = vrot.lane.b32.xlu0 %v3326_v55, %s3061_s20 }
  0x55   : > { %1753 = vrot.lane.b32.xlu1 %v3334_v58, %s3061_s20 }
  0x93   : > { %v543_v59 = vpop.permute.xlu0 %542 }
  0x94   : > { %2619 = vmatprep.mubr.msk.f32.mxu1 %vm339_vm7, %v543_v59 }
  0x97   : > { %v626_v60 = vpop.permute.xlu1 %625 }
  0x9b   : > { %v545_v61 = vpop.permute.xlu0 %544 }
  0x9c   : > { %2620 = vmatmul.mubr.msk.f32.vlgmr.msra.gmra.mrb[0].mxu1 %vm339_vm7, %v545_v61 }
  0x9d   : > { %2626 = vmatprep.mubr.msk.f32.mxu1 %vm339_vm7, %v626_v60  ;;  %2772 = vmatpush3.bf16.msra.mxu1 %v3182_v49 }
  0x9e   : > { %2782 = vmatprep.subr.bf16.mxu1 %v3135_v2 }
  0x9f   : > { %v628_v62 = vpop.permute.xlu1 %627  ;;  %v709_v63 = vpop.permute.xlu0 %708 }
  0xa0   : > { %2633 = vmatprep.mubr.msk.f32.mxu0 %vm339_vm7, %v709_v63 }
  0xa3   : > { %v711_v3 = vpop.permute.xlu1 %710  ;;  %v875_v4 = vpop.permute.xlu0 %874 }
  0xa4   : > { %2634 = vmatmul.mubr.msk.f32.vlgmr.msra.gmra.mrb[2].mxu0 %vm339_vm7, %v711_v3  ;;  %2627 = vmatmul.mubr.msk.f32.vlgmr.msra.gmra.mrb[0].mxu1 %vm339_vm7, %v628_v62 }
  0xa5   : > { %2784 = vmatpush3.bf16.msra.mxu1 %v3135_v2  ;;  %2647 = vmatprep.mubr.msk.f32.mxu1 %vm339_vm7, %v875_v4  ;;  %v1454_v2 = vld [vmem:[%s3475_s1 + $0x30] sm:$0xff] }
  0xa6   : > { %2780 = vmatpush3.bf16.msra.mxu0 %v3182_v49  ;;  %2786 = vmatprep.subr.bf16.mxu1 %v3182_v49  ;;  %v2805_v12 = vpack.c.bf16 %v1455_v10, %v1454_v2 }
  0xa7   : > { %v877_v6 = vpop.permute.xlu1 %876  ;;  %v792_v7 = vpop.permute.xlu0 %791  ;;  %2790 = vmatprep.subr.bf16.mxu0 %v2789_v5 }
  0xa8   : > { %2648 = vmatmul.mubr.msk.f32.vlgmr.msra.gmra.mrb[2].mxu1 %vm339_vm7, %v877_v6  ;;  %2640 = vmatprep.mubr.msk.f32.mxu0 %vm339_vm7, %v792_v7 }
  0xa9   : > { %2788 = vmatpush3.bf16.msra.mxu1 %v3182_v49 }
  0xaa   : > { %2794 = vmatprep.subr.bf16.mxu1 %v2789_v5 }
  0xab   : > { %v794_v50 = vpop.permute.xlu1 %793  ;;  %v958_v8 = vpop.permute.xlu0 %957 }
  0xac   : > { %2641 = vmatmul.mubr.msk.f32.vlgmr.msra.gmra.mrb[2].mxu0 %vm339_vm7, %v794_v50  ;;  %2654 = vmatprep.mubr.msk.f32.mxu1 %vm339_vm7, %v958_v8 }
  0xad   : > { %2792 = vmatpush3.bf16.msra.mxu0 %v2789_v5  ;;  %2661 = vmatprep.mubr.msk.f32.mxu0 %vm339_vm7, %v3293_v29  ;;  %v2825_v29 = vpack.c.bf16 %v250_v28, %v249_v27 }
  0xae   : > { %2798 = vmatprep.subr.bf16.mxu0 %v2789_v5 }
  0xaf   : > { %v960_v49 = vpop.permute.xlu1 %959  ;;  %v1184_v11 = vpop.permute.xlu0 %1183 }
  0xb0   : > { %2655 = vmatmul.mubr.msk.f32.vlgmr.msra.gmra.mrb[2].mxu1 %vm339_vm7, %v960_v49  ;;  %2662 = vmatmul.mubr.msk.f32.vlgmr.msra.gmra.mrb[0].mxu0 %vm339_vm7, %v3307_v40 }
  0xb1   : > { %2796 = vmatpush3.bf16.msra.mxu1 %v2789_v5  ;;  %2668 = vmatprep.mubr.msk.f32.mxu1 %vm339_vm7, %v1184_v11 }
  0xb2   : > { %2800 = vmatpush3.bf16.msra.mxu0 %v2789_v5  ;;  %2802 = vmatprep.subr.bf16.mxu1 %v2789_v5 }
  0xb3   : > { %v1186_v13 = vpop.permute.xlu1 %1185  ;;  %v1269_v14 = vpop.permute.xlu0 %1268  ;;  %2806 = vmatprep.subr.bf16.mxu0 %v2805_v12 }
  0xb4   : > { %2669 = vmatmul.mubr.msk.f32.vlgmr.msra.gmra.mrb[0].mxu1 %vm339_vm7, %v1186_v13  ;;  %2675 = vmatprep.mubr.msk.f32.mxu0 %vm339_vm7, %v1269_v14 }
  0xb5   : > { %2804 = vmatpush3.bf16.msra.mxu1 %v2789_v5 }
  0xb6   : > { %2810 = vmatprep.subr.bf16.mxu1 %v2805_v12 }
  0xb7   : > { %v1271_v15 = vpop.permute.xlu1 %1270  ;;  %v1354_v16 = vpop.permute.xlu0 %1353 }
  0xb8   : > { %2676 = vmatmul.mubr.msk.f32.vlgmr.msra.gmra.mrb[2].mxu0 %vm339_vm7, %v1271_v15  ;;  %2682 = vmatprep.mubr.msk.f32.mxu1 %vm339_vm7, %v1354_v16 }
  0xb9   : > { %2808 = vmatpush3.bf16.msra.mxu0 %v2805_v12  ;;  %2689 = vmatprep.mubr.msk.f32.mxu0 %vm339_vm7, %v3326_v55 }
  0xba   : > { %2814 = vmatprep.subr.bf16.mxu0 %v2805_v12 }
  0xbb   : > { %v1356_v19 = vpop.permute.xlu1 %1355  ;;  %v1582_v20 = vpop.permute.xlu0 %1581 }
  0xbc   : > { %2683 = vmatmul.mubr.msk.f32.vlgmr.msra.gmra.mrb[2].mxu1 %vm339_vm7, %v1356_v19  ;;  %2690 = vmatmul.mubr.msk.f32.vlgmr.msra.gmra.mrb[0].mxu0 %vm339_vm7, %v3334_v58 }
  0xbd   : > { %2812 = vmatpush3.bf16.msra.mxu1 %v2805_v12  ;;  %2696 = vmatprep.mubr.msk.f32.mxu1 %vm339_vm7, %v1582_v20 }
  0xbe   : > { %2816 = vmatpush3.bf16.msra.mxu0 %v2805_v12  ;;  %2818 = vmatprep.subr.bf16.mxu1 %v2805_v12 }
  0xbf   : > { %v1584_v22 = vpop.permute.xlu1 %1583  ;;  %v1667_v23 = vpop.permute.xlu0 %1666  ;;  %2822 = vmatprep.subr.bf16.mxu0 %v2821_v21 }
  0xc0   : > { %2697 = vmatmul.mubr.msk.f32.vlgmr.msra.gmra.mrb[0].mxu1 %vm339_vm7, %v1584_v22  ;;  %2703 = vmatprep.mubr.msk.f32.mxu0 %vm339_vm7, %v1667_v23 }
  0xc1   : > { %2820 = vmatpush3.bf16.msra.mxu1 %v2805_v12 }
  0xc2   : > { %2830 = vmatprep.subr.bf16.mxu1 %v2821_v21 }
  0xc3   : > { %v1669_v24 = vpop.permute.xlu1 %1668  ;;  %v1752_v25 = vpop.permute.xlu0 %1751 }
  0xc4   : > { %2704 = vmatmul.mubr.msk.f32.vlgmr.msra.gmra.mrb[2].mxu0 %vm339_vm7, %v1669_v24  ;;  %2710 = vmatprep.mubr.msk.f32.mxu1 %vm339_vm7, %v1752_v25 }
  0xc5   : > { %2824 = vmatpush3.bf16.msra.mxu0 %v2821_v21 }
  0xc6   : > { %2826 = vmatprep.subr.bf16.mxu0 %v2825_v29 }
  0xc7   : > { %v1754_v26 = vpop.permute.xlu1 %1753 }
  0xc8   : > { %2711 = vmatmul.mubr.msk.f32.vlgmr.msra.gmra.mrb[2].mxu1 %vm339_vm7, %v1754_v26 }
  0xc9   : > { %2832 = vmatpush3.bf16.msra.mxu1 %v2821_v21  ;;  %2828 = vmatpush3.bf16.msra.mxu0 %v2825_v29 }
  0xca   : > { %2834 = vmatprep.subr.bf16.mxu1 %v2825_v29  ;;  %2838 = vmatprep.subr.bf16.mxu0 %v2821_v21 }
  0xcd   : > { %2836 = vmatpush3.bf16.msra.mxu1 %v2825_v29 }
  0xce   : > { %2846 = vmatprep.subr.bf16.mxu1 %v2821_v21 }
 0x18f   : > { %v2691_v31 = vpop.f32.mrb[0].mxu0 }
 0x190   : > { %v1843_v32 = vadd.f32 %v2691_v31, %v2483_v30  ;;  %v1570_v33 = vpop.f32.mrb[1].mxu0 }
 0x191   : > { %v1842_v34 = vadd.f32 %v2483_v30, %v1570_v33 }
 0x192   : > { %v1845_v37 = vmax.f32 %v1843_v32, 0.0 }
 0x193   : > { %v1844_v35 = vmax.f32 %v1842_v34, 0.0  ;;  %v2698_v36 = vpop.f32.mrb[0].mxu1 }
 0x194   : > { %v1938_v9 = vadd.f32 %v2698_v36, %v2483_v30  ;;  %v1655_v38 = vpop.f32.mrb[1].mxu1 }
 0x195   : > { %v1937_v39 = vadd.f32 %v2483_v30, %v1655_v38  ;;  %2721 = vmatprep.mubr.msk.f32.mxu0 %vm1852_vm8, %v1844_v35 }
 0x196   : > { %2722 = vmatmul.mubr.msk.f32.vlgmr.msra.gmra.mrb[4].mxu0 %vm1852_vm8, %v1845_v37  ;;  %v1940_v42 = vmax.f32 %v1938_v9, 0.0 }
 0x197   : > { %v1939_v40 = vmax.f32 %v1937_v39, 0.0  ;;  %v2705_v41 = vpop.f32.mrb[2].mxu0  ;;  %2840 = vmatpush3.bf16.msra.mxu0 %v2821_v21 }
 0x198   : > { %v2034_v43 = vadd.f32 %v2705_v41, %v2483_v30  ;;  %v1740_v45 = vpop.f32.mrb[3].mxu0  ;;  %2842 = vmatprep.subr.bf16.mxu0 %v2825_v29 }
 0x199   : > { %v2033_v46 = vadd.f32 %v2483_v30, %v1740_v45  ;;  %2732 = vmatprep.mubr.msk.f32.mxu1 %vm1852_vm8, %v1939_v40 }
 0x19a   : > { %2733 = vmatmul.mubr.msk.f32.vlgmr.msra.gmra.mrb[4].mxu1 %vm1852_vm8, %v1940_v42  ;;  %v2036_v48 = vmax.f32 %v2034_v43, 0.0 }
 0x19b   : > { %v2035_v47 = vmax.f32 %v2033_v46, 0.0  ;;  %v2712_v44 = vpop.f32.mrb[2].mxu1  ;;  %2844 = vmatpush3.bf16.msra.mxu0 %v2825_v29  ;;  %2848 = vmatpush3.bf16.msra.mxu1 %v2821_v21 }
 0x19c   : > { %v2130_v51 = vadd.f32 %v2712_v44, %v2483_v30  ;;  %v1825_v52 = vpop.f32.mrb[3].mxu1  ;;  %2850 = vmatprep.subr.bf16.mxu1 %v2825_v29 }
 0x19d   : > { %v2129_v53 = vadd.f32 %v2483_v30, %v1825_v52  ;;  %2743 = vmatprep.mubr.msk.f32.mxu0 %vm1852_vm8, %v2035_v47 }
 0x19e   : > { %2744 = vmatmul.mubr.msk.f32.vlgmr.msra.gmra.mrb[6].mxu0 %vm1852_vm8, %v2036_v48  ;;  %v2132_v55 = vmax.f32 %v2130_v51, 0.0 }
 0x19f   : > { %v2131_v54 = vmax.f32 %v2129_v53, 0.0  ;;  %2852 = vmatpush3.bf16.msra.mxu1 %v2825_v29 }
 0x1a1   : > { %2754 = vmatprep.mubr.msk.f32.mxu1 %vm1852_vm8, %v2131_v54 }
 0x1a2   : > { %2755 = vmatmul.mubr.msk.f32.vlgmr.msra.gmra.mrb[6].mxu1 %vm1852_vm8, %v2132_v55 }
 0x269   : > { %v2723_v57 = vpop.f32.mrb[4].mxu0 }
 0x26a   : > { %v1931_v58 = vadd.f32 %v2723_v57, %v2484_v56  ;;  %v1925_v59 = vpop.f32.mrb[5].mxu0 }
 0x26b   : > { %v1926_v60 = vadd.f32 %v2484_v56, %v1925_v59 }
 0x26c   : > { %1936 = vst.msk [vmem:[%s3423_s30 + $0x8] sm:$0xff] %vm1934_vm9, %v1931_v58 }
 0x26d   : > { %1935 = vst.msk [vmem:[%s3423_s30] sm:$0xff] %vm1934_vm9, %v1926_v60  ;;  %v2734_v61 = vpop.f32.mrb[4].mxu1 }
 0x26e   : > { %v2013_v62 = vpop.f32.mrb[5].mxu1  ;;  %v2019_v5 = vadd.f32 %v2734_v61, %v2484_v56 }
 0x26f   : > { %v2014_v7 = vadd.f32 %v2484_v56, %v2013_v62 }
 0x271   : > { %v2745_v63 = vpop.f32.mrb[6].mxu0 }
 0x272   : > { %v2115_v0 = vadd.f32 %v2745_v63, %v2484_v56  ;;  %v2109_v1 = vpop.f32.mrb[7].mxu0 }
 0x273   : > { %v2110_v3 = vadd.f32 %v2484_v56, %v2109_v1 }
 0x274   : > { %2122 = vrot.lane.b32.xlu1 %v2115_v0, %s3062_s18 }
 0x275   : > { %v2756_v4 = vpop.f32.mrb[6].mxu1  ;;  %2120 = vrot.lane.b32.xlu0 %v2110_v3, %s3062_s18 }
 0x276   : > { %v2205_v6 = vpop.f32.mrb[7].mxu1  ;;  %v2211_v50 = vadd.f32 %v2756_v4, %v2484_v56 }
 0x277   : > { %v2206_v8 = vadd.f32 %v2484_v56, %v2205_v6 }
 0x278   : > { %2026 = vrot.lane.b32.xlu1 %v2019_v5, %s3063_s6 }
 0x279   : > { %2024 = vrot.lane.b32.xlu0 %v2014_v7, %s3063_s6 }
 0x27c   : > { %2218 = vrot.lane.b32.xlu1 %v2211_v50, %s3064_s7 }
 0x27d   : > { %2216 = vrot.lane.b32.xlu0 %v2206_v8, %s3064_s7 }
 0x2e6   : > { %v2123_v2 = vpop.permute.xlu1 %2122 }
 0x2e7   : > { %v2121_v10 = vpop.permute.xlu0 %2120 }
 0x2ea   : > { %v2027_v49 = vpop.permute.xlu1 %2026  ;;  %2231 = sbr.rel (!%p3120_p4) target bundleno = 802 (0x322), region = 44 }
 0x2eb   : > { %2032 = vst.msk [vmem:[%s3423_s30 + $0x8] sm:$0xff] %vm2030_vm10, %v2027_v49  ;;  %v2025_v11 = vpop.permute.xlu0 %2024 }
 0x2ec   : > { %2031 = vst.msk [vmem:[%s3423_s30] sm:$0xff] %vm2030_vm10, %v2025_v11 }
 0x2ed   : > { %2128 = vst.msk [vmem:[%s3423_s30 + $0x8] sm:$0xff] %vm2126_vm11, %v2123_v2  ;;  %2127 = vst.msk [vmem:[%s3423_s30] sm:$0xff] %vm2126_vm11, %v2121_v10 }
 0x2ee   : > { %v2219_v12 = vpop.permute.xlu1 %2218 }
 0x2ef   : > { %2224 = vst.msk [vmem:[%s3423_s30 + $0x8] sm:$0xff] %vm2222_vm12, %v2219_v12  ;;  %v2217_v13 = vpop.permute.xlu0 %2216 }
 0x2f0   : > { %2223 = vst.msk [vmem:[%s3423_s30] sm:$0xff] %vm2222_vm12, %v2217_v13 }
 0x2f1   : > { %s3485_s12 = smov (!%p2234_p8, %s2233_s12), 2 }
 0x2f2   : > { %s2495_s13 = sshll.u32 %s3485_s12, 7 }
 0x2f3   : > { %p2498_p9 = scmp.eq.s32.totalorder %s2495_s13, 0 }
 0x2f4   : > { %s3446_s14 = sshrl.u32 (!%p2498_p9), %s3485_s12, 1 }
 0x2f5   : > { %2242 = sbr.rel (%p2498_p9) target bundleno = 802 (0x322), region = 48  ;;  %p2499_p10 = scmp.le.s32.totalorder (!%p2498_p9), %s3446_s14, 0 }
 0x2fc   : > { %2400 = sbr.rel (%p2499_p10) target bundleno = 781 (0x30d), region = 124  ;;  %s3027_s21 = smov (!%p2499_p10), %s3440_s11  }
 0x2fd   : > { %s3031_s26 = smov (!%p2499_p10), %s3423_s30   ;;  %s3035_s27 = smov (!%p2499_p10), 0  }
 0x2fe   : > { %s3039_s15 = smov (!%p2499_p10), 0  }
 0x303 LB: >> { %v2306_v14 = vld [vmem:[%s3033_s26] sm:$0xff]  ;;  %v2308_v15 = vld [vmem:[%s3033_s26 + $0x8] sm:$0xff]  ;;  %s2310_s16 = sadd.s32 1, %s3037_s27  ;;  %s2300_s15 = sadd.s32 1, %s3041_s15   ;;  %s3041_s15 = sphi %s3039_s15, %s2300_s15   ;;  %s3037_s27 = sphi %s3035_s27, %s3036_s27   ;;  %s3033_s26 = sphi %s3031_s26, %s2315_s26   ;;  %s3029_s21 = sphi %s3027_s21, %s2316_s21  }
 0x304   : >> { %2307 = vst [vmem:[%s3029_s21] sm:$0xff] %v2306_v14  ;;  %2309 = vst [vmem:[%s3029_s21 + $0x8] sm:$0xff] %v2308_v15  ;;  %p2311_p11 = scmp.ge.s32.totalorder %s2310_s16, %s3446_s14  ;;  %p2299_p12 = scmp.ge.s32.totalorder %s2300_s15, %s3446_s14 }
 0x306   : >> { %s3487_s16 = smov (%p2311_p11, %s2310_s16), 0  ;;  %2302 = sbr.rel (!%p2299_p12) target bundleno = 771 (0x303), region = 130 }
 0x307   : >> { %s2500_s17 = sshll.u32 %s3487_s16, 4  ;;  %s3036_s27 = smov %s3487_s16  }
 0x308   : >> { %s2315_s26 = scalar_lea.vmem %s3423_s30, %s2500_s17 [#allocation2]   ;;  %s2316_s21 = scalar_lea.vmem %s3440_s11, %s2500_s17  }
 0x30d PF: > { %s3456_s20 = sand.u32 1, %s3485_s12   ;;  %s2511_s23 = sshll.u32 %s3446_s14, 4 }
 0x30e   : > { %s2321_s24 = scalar_lea.vmem %s3423_s30, %s2511_s23 [#allocation2]   ;;  %s2323_s28 = scalar_lea.vmem %s3440_s11, %s2511_s23  }
 0x30f   : > { %p2505_p13 = scmp.le.s32.totalorder %s3456_s20, 0 }
 0x310   : > { %s3043_s29 = smov (!%p2505_p13), %s2323_s28   ;;  %s3047_s18 = smov (!%p2505_p13), %s2321_s24  }
 0x311   : > { %2414 = sbr.rel (%p2505_p13) target bundleno = 802 (0x322), region = 135  ;;  %s3051_s6 = smov (!%p2505_p13), 0  }
 0x312   : > { %s3055_s7 = smov (!%p2505_p13), 0  }
 0x318 LB: >> { %v2333_v16 = vld [vmem:[%s3049_s18] sm:$0xff]  ;;  %s2335_s8 = sadd.s32 1, %s3053_s6  ;;  %s2327_s7 = sadd.s32 1, %s3057_s7   ;;  %s3057_s7 = sphi %s3055_s7, %s2327_s7   ;;  %s3053_s6 = sphi %s3051_s6, %s3052_s6   ;;  %s3049_s18 = sphi %s3047_s18, %s2340_s18   ;;  %s3045_s29 = sphi %s3043_s29, %s2341_s29  }
 0x319   : >> { %2334 = vst [vmem:[%s3045_s29] sm:$0xff] %v2333_v16  ;;  %p2336_p0 = scmp.ge.s32.totalorder %s2335_s8, %s3456_s20  ;;  %p2326_p1 = scmp.ge.s32.totalorder %s2327_s7, %s3456_s20 }
 0x31b   : >> { %s3489_s8 = smov (%p2336_p0, %s2335_s8), 0  ;;  %2329 = sbr.rel (!%p2326_p1) target bundleno = 792 (0x318), region = 141 }
 0x31c   : >> { %s2506_s30 = sshll.u32 %s3489_s8, 3  ;;  %s3052_s6 = smov %s3489_s8  }
 0x31d   : >> { %s2340_s18 = scalar_lea.vmem %s2321_s24, %s2506_s30 [#allocation2]   ;;  %s2341_s29 = scalar_lea.vmem %s2323_s28, %s2506_s30  }
 0x322 PF: > { %p12_p2 = scmp.ge.s32.totalorder %s3110_s22, 4   ;;  %s3481_s18 = smov %s3021_s19 }
 0x323   : > { %s3482_s19 = smov %s3118_s25  ;;  %s3483_s20 = smov %s3110_s22 }
 0x324   :  { %14 = sbr.rel (!%p12_p2) target bundleno = 2 (0x2), region = 152 }

</bundles_post_ra>
